<compile_context>
chip_gen: v6e
topology: v6e:2x2x1
jax: 0.10.0
libtpu: 0.0.40
codegen_flags: <defaults>
</compile_context>

<pallas_src>
import math

import jax
import jax.numpy as jnp
from jax.experimental import pallas as pl
from jax.experimental.pallas import tpu as pltpu

_LANE = 128
_SUBLANE = 8


def _round_up(n, m):
    return (n + m - 1) // m * m


def _vmem_limit_bytes():
    # Derive the VMEM budget per generation instead of hard-coding 64 MiB
    # (which is the entire physical per-TC VMEM on v7x).  ~16 MiB headroom.
    try:
        cap = pltpu.get_tpu_info().vmem_capacity_bytes
    except Exception:
        cap = 64 * 1024 * 1024
    return max(32 * 1024 * 1024, cap - 16 * 1024 * 1024)


def _autoencoder_kernel(x_ref,
                        we0, be0, we1, be1, we2, be2, we3, be3,
                        wd0, bd0, wd1, bd1, wd2, bd2, wd3, bd3,
                        out_ref):
    """One grid step processes a (TM, input_features) tile of the batch."""

    def layer(h, w_ref, b_ref, act):
        # bf16 operands on the MXU, f32 accumulation, f32 bias/activation.
        z = jnp.dot(h.astype(jnp.bfloat16), w_ref[...],
                    preferred_element_type=jnp.float32) + b_ref[...]
        return act(z)

    h = x_ref[...].astype(jnp.float32)

    # ---- encoder: 4 x (Linear -> Tanh) ----
    h = layer(h, we0, be0, jnp.tanh)
    h = layer(h, we1, be1, jnp.tanh)
    h = layer(h, we2, be2, jnp.tanh)
    encoded = layer(h, we3, be3, jnp.tanh)

    # ---- decoder: 3 x (Linear -> Tanh) + (Linear -> Sigmoid) ----
    d = layer(encoded, wd0, bd0, jnp.tanh)
    d = layer(d, wd1, bd1, jnp.tanh)
    d = layer(d, wd2, bd2, jnp.tanh)
    decoded = layer(d, wd3, bd3, jax.nn.sigmoid)

    # Lane-dense writeback: pack encoded|decoded|zero-pad into one slab whose
    # last dim is a multiple of 128 so the store uses full, unmasked vregs.
    tm = encoded.shape[0]
    pad_w = out_ref.shape[-1] - encoded.shape[-1] - decoded.shape[-1]
    parts = [encoded, decoded]
    if pad_w > 0:
        parts.append(jnp.zeros((tm, pad_w), jnp.float32))
    out_ref[...] = jnp.concatenate(parts, axis=-1).astype(out_ref.dtype)


def autoencoder_pallas(x, params, *, block_rows=None, weight_buffers=1):
    """x: [B, input_features] float32.

    params: list of 8 (w, b) pairs (4 encoder, 4 decoder), w pre-transposed to
    [in, out] (f32; cast to bf16 here), b of shape [out].
    Returns (encoded [B, hidden_layer[3]], decoded [B, input_features]).
    """
    B, F_in = x.shape
    assert len(params) == 8
    enc_dim = params[3][0].shape[1]   # hidden_layer[3]
    dec_dim = params[7][0].shape[1]   # input_features
    assert dec_dim == F_in

    # --- batch tiling -------------------------------------------------------
    # Prefer one fat grid step (or 512-row tiles for huge batches): tile
    # sweeps show 128-row tiles reach only ~29% of roofline vs ~85% at 512,
    # and each step here does almost no MXU work.
    if block_rows is None:
        b8 = _round_up(B, _SUBLANE)
        block_rows = b8 if b8 <= 1024 else 512
    TM = _round_up(block_rows, _SUBLANE)

    B_pad = _round_up(B, TM)
    if B_pad != B:
        x = jnp.pad(x, ((0, B_pad - B), (0, 0)))
    grid = (B_pad // TM,)

    out_w = _round_up(enc_dim + dec_dim, _LANE)   # lane-dense output slab

    # --- flatten params: bf16 weights, (1, out) f32 bias tiles ---------------
    w_mode = pl.Buffered(weight_buffers) if weight_buffers is not None else None

    def _const_spec(shape):
        # Constant index_map -> DMA'd once, VMEM-resident across grid steps;
        # single-buffered (when requested) since the block never changes.
        if w_mode is None:
            return pl.BlockSpec(shape, lambda i: (0, 0))
        return pl.BlockSpec(shape, lambda i: (0, 0), pipeline_mode=w_mode)

    flat_args = []
    in_specs = [pl.BlockSpec((TM, F_in), lambda i: (i, 0))]   # x tile
    for (w, b) in params:
        in_dim, o_dim = w.shape
        flat_args.append(w.astype(jnp.bfloat16))
        flat_args.append(b.reshape(1, o_dim).astype(jnp.float32))
        in_specs.append(_const_spec((in_dim, o_dim)))
        in_specs.append(_const_spec((1, o_dim)))

    # --- advisory cost estimate ----------------------------------------------
    flops = 2 * B_pad * sum(w.shape[0] * w.shape[1] for w, _ in params)
    transcendentals = B_pad * sum(w.shape[1] for w, _ in params)
    bytes_accessed = (x.size * x.dtype.itemsize
                      + sum(a.size * a.dtype.itemsize for a in flat_args)
                      + B_pad * out_w * 4)
    cost = pl.CostEstimate(flops=flops, transcendentals=transcendentals,
                           bytes_accessed=bytes_accessed)

    slab = pl.pallas_call(
        _autoencoder_kernel,
        out_shape=jax.ShapeDtypeStruct((B_pad, out_w), x.dtype),
        grid_spec=pltpu.PrefetchScalarGridSpec(
            num_scalar_prefetch=0,
            grid=grid,
            in_specs=in_specs,
            out_specs=pl.BlockSpec((TM, out_w), lambda i: (i, 0)),
        ),
        compiler_params=pltpu.CompilerParams(
            dimension_semantics=("parallel",),
            vmem_limit_bytes=_vmem_limit_bytes(),
        ),
        cost_estimate=cost,
    )(x, *flat_args)

    encoded = slab[:B, :enc_dim]
    decoded = slab[:B, enc_dim:enc_dim + dec_dim]
    return encoded, decoded


def init_params(key, input_features, hidden_layer):
    """Deterministic init mirroring PyTorch nn.Linear defaults.

    Weights stored pre-transposed as [in, out] so the kernel computes x @ W + b.
    """
    dims = [input_features] + list(hidden_layer)            # encoder widths
    enc_shapes = [(dims[i], dims[i + 1]) for i in range(4)]
    dec_dims = [hidden_layer[3], hidden_layer[2], hidden_layer[1],
                hidden_layer[0], input_features]
    dec_shapes = [(dec_dims[i], dec_dims[i + 1]) for i in range(4)]

    shapes = enc_shapes + dec_shapes
    keys = jax.random.split(key, 2 * len(shapes))
    params = []
    for idx, (fan_in, fan_out) in enumerate(shapes):
        scale = 1.0 / math.sqrt(fan_in)
        w = jax.random.uniform(keys[2 * idx], (fan_in, fan_out),
                               jnp.float32, -scale, scale)
        b = jax.random.uniform(keys[2 * idx + 1], (fan_out,),
                               jnp.float32, -scale, scale)
        params.append((w, b))
    return params


def reference_autoencoder(x, params, operand_dtype=None):
    """Pure-JAX reference mirroring the PyTorch forward.

    With operand_dtype=jnp.bfloat16 it mirrors the kernel's bf16-operand /
    f32-accumulate matmul math exactly.
    """
    cast = (lambda a: a) if operand_dtype is None else (lambda a: a.astype(operand_dtype))
    h = x
    encoded = None
    for i, (w, b) in enumerate(params):
        z = jnp.dot(cast(h), cast(w), preferred_element_type=jnp.float32) + b
        h = jax.nn.sigmoid(z) if i == 7 else jnp.tanh(z)
        if i == 3:
            encoded = h
    return encoded, h


if __name__ == "__main__":
    INPUT_FEATURES = 32
    HIDDEN_LAYER = (64, 32, 16, 8)
    BATCH = 16

    key = jax.random.PRNGKey(0)
    k_x, k_p = jax.random.split(key)
    x = jax.random.normal(k_x, (BATCH, INPUT_FEATURES), jnp.float32)
    params = init_params(k_p, INPUT_FEATURES, HIDDEN_LAYER)

    try:
        encoded, decoded = autoencoder_pallas(x, params, weight_buffers=1)
        encoded, decoded = jax.block_until_ready((encoded, decoded))
    except Exception:
        # Safety net: fall back to default (double-buffered) weight pipelining.
        encoded, decoded = autoencoder_pallas(x, params, weight_buffers=None)
        encoded, decoded = jax.block_until_ready((encoded, decoded))

    # Reference mirroring the kernel's bf16-operand / f32-accumulate math.
    ref_enc_bf, ref_dec_bf = reference_autoencoder(x, params,
                                                   operand_dtype=jnp.bfloat16)
    # Full-f32 reference (the original module) for a loose sanity check.
    ref_enc_f32, ref_dec_f32 = reference_autoencoder(x, params)

    assert encoded.shape == (BATCH, HIDDEN_LAYER[3])
    assert decoded.shape == (BATCH, INPUT_FEATURES)
    assert jnp.allclose(encoded, ref_enc_bf, atol=5e-3, rtol=5e-3)
    assert jnp.allclose(decoded, ref_dec_bf, atol=5e-3, rtol=5e-3)
    assert jnp.allclose(encoded, ref_enc_f32, atol=1e-1)
    assert jnp.allclose(decoded, ref_dec_f32, atol=1e-1)

    print("KERNEL_OK")
</pallas_src>

<mosaic_0001>
module attributes {stable_mosaic.version = 11 : i64} {
  func.func @_autoencoder_kernel(%arg0: i32, %arg1: memref<16x32xf32, #tpu.memory_space<vmem>>, %arg2: memref<32x64xbf16, #tpu.memory_space<vmem>>, %arg3: memref<1x64xf32, #tpu.memory_space<vmem>>, %arg4: memref<64x32xbf16, #tpu.memory_space<vmem>>, %arg5: memref<1x32xf32, #tpu.memory_space<vmem>>, %arg6: memref<32x16xbf16, #tpu.memory_space<vmem>>, %arg7: memref<1x16xf32, #tpu.memory_space<vmem>>, %arg8: memref<16x8xbf16, #tpu.memory_space<vmem>>, %arg9: memref<1x8xf32, #tpu.memory_space<vmem>>, %arg10: memref<8x16xbf16, #tpu.memory_space<vmem>>, %arg11: memref<1x16xf32, #tpu.memory_space<vmem>>, %arg12: memref<16x32xbf16, #tpu.memory_space<vmem>>, %arg13: memref<1x32xf32, #tpu.memory_space<vmem>>, %arg14: memref<32x64xbf16, #tpu.memory_space<vmem>>, %arg15: memref<1x64xf32, #tpu.memory_space<vmem>>, %arg16: memref<64x32xbf16, #tpu.memory_space<vmem>>, %arg17: memref<1x32xf32, #tpu.memory_space<vmem>>, %arg18: memref<16x128xf32, #tpu.memory_space<vmem>>) attributes {dimension_semantics = [#tpu.dimension_semantics<parallel>], iteration_bounds = array<i64: 1>, scalar_prefetch = 0 : i64, scratch_operands = 0 : i64, tpu.core_type = #tpu.core_type<tc>, window_params = [{transform_indices = @transform_0, window_bounds = array<i64: 16, 32>}, {pipeline_mode = #tpu.pipeline_mode<synchronous>, transform_indices = @transform_1, window_bounds = array<i64: 32, 64>}, {pipeline_mode = #tpu.pipeline_mode<synchronous>, transform_indices = @transform_2, window_bounds = array<i64: 1, 64>}, {pipeline_mode = #tpu.pipeline_mode<synchronous>, transform_indices = @transform_3, window_bounds = array<i64: 64, 32>}, {pipeline_mode = #tpu.pipeline_mode<synchronous>, transform_indices = @transform_4, window_bounds = array<i64: 1, 32>}, {pipeline_mode = #tpu.pipeline_mode<synchronous>, transform_indices = @transform_5, window_bounds = array<i64: 32, 16>}, {pipeline_mode = #tpu.pipeline_mode<synchronous>, transform_indices = @transform_6, window_bounds = array<i64: 1, 16>}, {pipeline_mode = #tpu.pipeline_mode<synchronous>, transform_indices = @transform_7, window_bounds = array<i64: 16, 8>}, {pipeline_mode = #tpu.pipeline_mode<synchronous>, transform_indices = @transform_8, window_bounds = array<i64: 1, 8>}, {pipeline_mode = #tpu.pipeline_mode<synchronous>, transform_indices = @transform_9, window_bounds = array<i64: 8, 16>}, {pipeline_mode = #tpu.pipeline_mode<synchronous>, transform_indices = @transform_10, window_bounds = array<i64: 1, 16>}, {pipeline_mode = #tpu.pipeline_mode<synchronous>, transform_indices = @transform_11, window_bounds = array<i64: 16, 32>}, {pipeline_mode = #tpu.pipeline_mode<synchronous>, transform_indices = @transform_12, window_bounds = array<i64: 1, 32>}, {pipeline_mode = #tpu.pipeline_mode<synchronous>, transform_indices = @transform_13, window_bounds = array<i64: 32, 64>}, {pipeline_mode = #tpu.pipeline_mode<synchronous>, transform_indices = @transform_14, window_bounds = array<i64: 1, 64>}, {pipeline_mode = #tpu.pipeline_mode<synchronous>, transform_indices = @transform_15, window_bounds = array<i64: 64, 32>}, {pipeline_mode = #tpu.pipeline_mode<synchronous>, transform_indices = @transform_16, window_bounds = array<i64: 1, 32>}, {transform_indices = @transform_17, window_bounds = array<i64: 16, 128>}]} {
    %c0 = arith.constant 0 : index
    %c0_0 = arith.constant 0 : index
    %0 = vector.load %arg1[%c0, %c0_0] : memref<16x32xf32, #tpu.memory_space<vmem>>, vector<16x32xf32>
    %1 = arith.truncf %0 : vector<16x32xf32> to vector<16x32xbf16>
    %c0_1 = arith.constant 0 : index
    %c0_2 = arith.constant 0 : index
    %2 = vector.load %arg2[%c0_1, %c0_2] : memref<32x64xbf16, #tpu.memory_space<vmem>>, vector<32x64xbf16>
    %cst = arith.constant dense<0.000000e+00> : vector<16x64xf32>
    %3 = tpu.matmul %1, %2, %cst {dimension_numbers = #tpu.dot_dimension_numbers<[1], [0], [0], [1], [0, 0, 1, 1], [], []>} : vector<16x32xbf16>, vector<32x64xbf16>, vector<16x64xf32> -> vector<16x64xf32>
    %c0_3 = arith.constant 0 : index
    %c0_4 = arith.constant 0 : index
    %4 = vector.load %arg3[%c0_3, %c0_4] : memref<1x64xf32, #tpu.memory_space<vmem>>, vector<1x64xf32>
    %5 = vector.broadcast %4 : vector<1x64xf32> to vector<16x64xf32>
    %6 = arith.addf %3, %5 : vector<16x64xf32>
    %7 = math.tanh %6 : vector<16x64xf32>
    %8 = arith.truncf %7 : vector<16x64xf32> to vector<16x64xbf16>
    %c0_5 = arith.constant 0 : index
    %c0_6 = arith.constant 0 : index
    %9 = vector.load %arg4[%c0_5, %c0_6] : memref<64x32xbf16, #tpu.memory_space<vmem>>, vector<64x32xbf16>
    %cst_7 = arith.constant dense<0.000000e+00> : vector<16x32xf32>
    %10 = tpu.matmul %8, %9, %cst_7 {dimension_numbers = #tpu.dot_dimension_numbers<[1], [0], [0], [1], [0, 0, 1, 1], [], []>} : vector<16x64xbf16>, vector<64x32xbf16>, vector<16x32xf32> -> vector<16x32xf32>
    %c0_8 = arith.constant 0 : index
    %c0_9 = arith.constant 0 : index
    %11 = vector.load %arg5[%c0_8, %c0_9] : memref<1x32xf32, #tpu.memory_space<vmem>>, vector<1x32xf32>
    %12 = vector.broadcast %11 : vector<1x32xf32> to vector<16x32xf32>
    %13 = arith.addf %10, %12 : vector<16x32xf32>
    %14 = math.tanh %13 : vector<16x32xf32>
    %15 = arith.truncf %14 : vector<16x32xf32> to vector<16x32xbf16>
    %c0_10 = arith.constant 0 : index
    %c0_11 = arith.constant 0 : index
    %16 = vector.load %arg6[%c0_10, %c0_11] : memref<32x16xbf16, #tpu.memory_space<vmem>>, vector<32x16xbf16>
    %cst_12 = arith.constant dense<0.000000e+00> : vector<16x16xf32>
    %17 = tpu.matmul %15, %16, %cst_12 {dimension_numbers = #tpu.dot_dimension_numbers<[1], [0], [0], [1], [0, 0, 1, 1], [], []>} : vector<16x32xbf16>, vector<32x16xbf16>, vector<16x16xf32> -> vector<16x16xf32>
    %c0_13 = arith.constant 0 : index
    %c0_14 = arith.constant 0 : index
    %18 = vector.load %arg7[%c0_13, %c0_14] : memref<1x16xf32, #tpu.memory_space<vmem>>, vector<1x16xf32>
    %19 = vector.broadcast %18 : vector<1x16xf32> to vector<16x16xf32>
    %20 = arith.addf %17, %19 : vector<16x16xf32>
    %21 = math.tanh %20 : vector<16x16xf32>
    %22 = arith.truncf %21 : vector<16x16xf32> to vector<16x16xbf16>
    %c0_15 = arith.constant 0 : index
    %c0_16 = arith.constant 0 : index
    %23 = vector.load %arg8[%c0_15, %c0_16] : memref<16x8xbf16, #tpu.memory_space<vmem>>, vector<16x8xbf16>
    %cst_17 = arith.constant dense<0.000000e+00> : vector<16x8xf32>
    %24 = tpu.matmul %22, %23, %cst_17 {dimension_numbers = #tpu.dot_dimension_numbers<[1], [0], [0], [1], [0, 0, 1, 1], [], []>} : vector<16x16xbf16>, vector<16x8xbf16>, vector<16x8xf32> -> vector<16x8xf32>
    %c0_18 = arith.constant 0 : index
    %c0_19 = arith.constant 0 : index
    %25 = vector.load %arg9[%c0_18, %c0_19] : memref<1x8xf32, #tpu.memory_space<vmem>>, vector<1x8xf32>
    %26 = vector.broadcast %25 : vector<1x8xf32> to vector<16x8xf32>
    %27 = arith.addf %24, %26 : vector<16x8xf32>
    %28 = math.tanh %27 : vector<16x8xf32>
    %29 = arith.truncf %28 : vector<16x8xf32> to vector<16x8xbf16>
    %c0_20 = arith.constant 0 : index
    %c0_21 = arith.constant 0 : index
    %30 = vector.load %arg10[%c0_20, %c0_21] : memref<8x16xbf16, #tpu.memory_space<vmem>>, vector<8x16xbf16>
    %cst_22 = arith.constant dense<0.000000e+00> : vector<16x16xf32>
    %31 = tpu.matmul %29, %30, %cst_22 {dimension_numbers = #tpu.dot_dimension_numbers<[1], [0], [0], [1], [0, 0, 1, 1], [], []>} : vector<16x8xbf16>, vector<8x16xbf16>, vector<16x16xf32> -> vector<16x16xf32>
    %c0_23 = arith.constant 0 : index
    %c0_24 = arith.constant 0 : index
    %32 = vector.load %arg11[%c0_23, %c0_24] : memref<1x16xf32, #tpu.memory_space<vmem>>, vector<1x16xf32>
    %33 = vector.broadcast %32 : vector<1x16xf32> to vector<16x16xf32>
    %34 = arith.addf %31, %33 : vector<16x16xf32>
    %35 = math.tanh %34 : vector<16x16xf32>
    %36 = arith.truncf %35 : vector<16x16xf32> to vector<16x16xbf16>
    %c0_25 = arith.constant 0 : index
    %c0_26 = arith.constant 0 : index
    %37 = vector.load %arg12[%c0_25, %c0_26] : memref<16x32xbf16, #tpu.memory_space<vmem>>, vector<16x32xbf16>
    %cst_27 = arith.constant dense<0.000000e+00> : vector<16x32xf32>
    %38 = tpu.matmul %36, %37, %cst_27 {dimension_numbers = #tpu.dot_dimension_numbers<[1], [0], [0], [1], [0, 0, 1, 1], [], []>} : vector<16x16xbf16>, vector<16x32xbf16>, vector<16x32xf32> -> vector<16x32xf32>
    %c0_28 = arith.constant 0 : index
    %c0_29 = arith.constant 0 : index
    %39 = vector.load %arg13[%c0_28, %c0_29] : memref<1x32xf32, #tpu.memory_space<vmem>>, vector<1x32xf32>
    %40 = vector.broadcast %39 : vector<1x32xf32> to vector<16x32xf32>
    %41 = arith.addf %38, %40 : vector<16x32xf32>
    %42 = math.tanh %41 : vector<16x32xf32>
    %43 = arith.truncf %42 : vector<16x32xf32> to vector<16x32xbf16>
    %c0_30 = arith.constant 0 : index
    %c0_31 = arith.constant 0 : index
    %44 = vector.load %arg14[%c0_30, %c0_31] : memref<32x64xbf16, #tpu.memory_space<vmem>>, vector<32x64xbf16>
    %cst_32 = arith.constant dense<0.000000e+00> : vector<16x64xf32>
    %45 = tpu.matmul %43, %44, %cst_32 {dimension_numbers = #tpu.dot_dimension_numbers<[1], [0], [0], [1], [0, 0, 1, 1], [], []>} : vector<16x32xbf16>, vector<32x64xbf16>, vector<16x64xf32> -> vector<16x64xf32>
    %c0_33 = arith.constant 0 : index
    %c0_34 = arith.constant 0 : index
    %46 = vector.load %arg15[%c0_33, %c0_34] : memref<1x64xf32, #tpu.memory_space<vmem>>, vector<1x64xf32>
    %47 = vector.broadcast %46 : vector<1x64xf32> to vector<16x64xf32>
    %48 = arith.addf %45, %47 : vector<16x64xf32>
    %49 = math.tanh %48 : vector<16x64xf32>
    %50 = arith.truncf %49 : vector<16x64xf32> to vector<16x64xbf16>
    %c0_35 = arith.constant 0 : index
    %c0_36 = arith.constant 0 : index
    %51 = vector.load %arg16[%c0_35, %c0_36] : memref<64x32xbf16, #tpu.memory_space<vmem>>, vector<64x32xbf16>
    %cst_37 = arith.constant dense<0.000000e+00> : vector<16x32xf32>
    %52 = tpu.matmul %50, %51, %cst_37 {dimension_numbers = #tpu.dot_dimension_numbers<[1], [0], [0], [1], [0, 0, 1, 1], [], []>} : vector<16x64xbf16>, vector<64x32xbf16>, vector<16x32xf32> -> vector<16x32xf32>
    %c0_38 = arith.constant 0 : index
    %c0_39 = arith.constant 0 : index
    %53 = vector.load %arg17[%c0_38, %c0_39] : memref<1x32xf32, #tpu.memory_space<vmem>>, vector<1x32xf32>
    %54 = vector.broadcast %53 : vector<1x32xf32> to vector<16x32xf32>
    %55 = arith.addf %52, %54 : vector<16x32xf32>
    %56 = arith.negf %55 : vector<16x32xf32>
    %57 = math.exp %56 : vector<16x32xf32>
    %cst_40 = arith.constant 1.000000e+00 : f32
    %58 = vector.broadcast %cst_40 : f32 to vector<16x32xf32>
    %59 = arith.addf %58, %57 : vector<16x32xf32>
    %60 = arith.divf %58, %59 : vector<16x32xf32>
    %cst_41 = arith.constant 0.000000e+00 : f32
    %61 = vector.broadcast %cst_41 : f32 to vector<16x88xf32>
    %62 = tpu.concatenate %28, %60, %61 in 1 : vector<16x8xf32>, vector<16x32xf32>, vector<16x88xf32> -> vector<16x128xf32>
    %c0_42 = arith.constant 0 : index
    %c0_43 = arith.constant 0 : index
    %63 = vector.load %arg18[%c0_42, %c0_43] : memref<16x128xf32, #tpu.memory_space<vmem>>, vector<16x128xf32>
    tpu.vector_store %arg18[%c0_42, %c0_43], %62 {strides = array<i32>} : memref<16x128xf32, #tpu.memory_space<vmem>>, vector<16x128xf32>,
    return
  }
  func.func @transform_0(%arg0: i32) -> (i32, i32) {
    %c0_i32 = arith.constant 0 : i32
    %c0_i32_0 = arith.constant 0 : i32
    return %arg0, %c0_i32 : i32, i32
  }
  func.func @transform_1(%arg0: i32) -> (i32, i32) {
    %c0_i32 = arith.constant 0 : i32
    %c0_i32_0 = arith.constant 0 : i32
    %c0_i32_1 = arith.constant 0 : i32
    return %c0_i32, %c0_i32_0 : i32, i32
  }
  func.func @transform_2(%arg0: i32) -> (i32, i32) {
    %c0_i32 = arith.constant 0 : i32
    %c0_i32_0 = arith.constant 0 : i32
    %c0_i32_1 = arith.constant 0 : i32
    return %c0_i32, %c0_i32_0 : i32, i32
  }
  func.func @transform_3(%arg0: i32) -> (i32, i32) {
    %c0_i32 = arith.constant 0 : i32
    %c0_i32_0 = arith.constant 0 : i32
    %c0_i32_1 = arith.constant 0 : i32
    return %c0_i32, %c0_i32_0 : i32, i32
  }
  func.func @transform_4(%arg0: i32) -> (i32, i32) {
    %c0_i32 = arith.constant 0 : i32
    %c0_i32_0 = arith.constant 0 : i32
    %c0_i32_1 = arith.constant 0 : i32
    return %c0_i32, %c0_i32_0 : i32, i32
  }
  func.func @transform_5(%arg0: i32) -> (i32, i32) {
    %c0_i32 = arith.constant 0 : i32
    %c0_i32_0 = arith.constant 0 : i32
    %c0_i32_1 = arith.constant 0 : i32
    return %c0_i32, %c0_i32_0 : i32, i32
  }
  func.func @transform_6(%arg0: i32) -> (i32, i32) {
    %c0_i32 = arith.constant 0 : i32
    %c0_i32_0 = arith.constant 0 : i32
    %c0_i32_1 = arith.constant 0 : i32
    return %c0_i32, %c0_i32_0 : i32, i32
  }
  func.func @transform_7(%arg0: i32) -> (i32, i32) {
    %c0_i32 = arith.constant 0 : i32
    %c0_i32_0 = arith.constant 0 : i32
    %c0_i32_1 = arith.constant 0 : i32
    return %c0_i32, %c0_i32_0 : i32, i32
  }
  func.func @transform_8(%arg0: i32) -> (i32, i32) {
    %c0_i32 = arith.constant 0 : i32
    %c0_i32_0 = arith.constant 0 : i32
    %c0_i32_1 = arith.constant 0 : i32
    return %c0_i32, %c0_i32_0 : i32, i32
  }
  func.func @transform_9(%arg0: i32) -> (i32, i32) {
    %c0_i32 = arith.constant 0 : i32
    %c0_i32_0 = arith.constant 0 : i32
    %c0_i32_1 = arith.constant 0 : i32
    return %c0_i32, %c0_i32_0 : i32, i32
  }
  func.func @transform_10(%arg0: i32) -> (i32, i32) {
    %c0_i32 = arith.constant 0 : i32
    %c0_i32_0 = arith.constant 0 : i32
    %c0_i32_1 = arith.constant 0 : i32
    return %c0_i32, %c0_i32_0 : i32, i32
  }
  func.func @transform_11(%arg0: i32) -> (i32, i32) {
    %c0_i32 = arith.constant 0 : i32
    %c0_i32_0 = arith.constant 0 : i32
    %c0_i32_1 = arith.constant 0 : i32
    return %c0_i32, %c0_i32_0 : i32, i32
  }
  func.func @transform_12(%arg0: i32) -> (i32, i32) {
    %c0_i32 = arith.constant 0 : i32
    %c0_i32_0 = arith.constant 0 : i32
    %c0_i32_1 = arith.constant 0 : i32
    return %c0_i32, %c0_i32_0 : i32, i32
  }
  func.func @transform_13(%arg0: i32) -> (i32, i32) {
    %c0_i32 = arith.constant 0 : i32
    %c0_i32_0 = arith.constant 0 : i32
    %c0_i32_1 = arith.constant 0 : i32
    return %c0_i32, %c0_i32_0 : i32, i32
  }
  func.func @transform_14(%arg0: i32) -> (i32, i32) {
    %c0_i32 = arith.constant 0 : i32
    %c0_i32_0 = arith.constant 0 : i32
    %c0_i32_1 = arith.constant 0 : i32
    return %c0_i32, %c0_i32_0 : i32, i32
  }
  func.func @transform_15(%arg0: i32) -> (i32, i32) {
    %c0_i32 = arith.constant 0 : i32
    %c0_i32_0 = arith.constant 0 : i32
    %c0_i32_1 = arith.constant 0 : i32
    return %c0_i32, %c0_i32_0 : i32, i32
  }
  func.func @transform_16(%arg0: i32) -> (i32, i32) {
    %c0_i32 = arith.constant 0 : i32
    %c0_i32_0 = arith.constant 0 : i32
    %c0_i32_1 = arith.constant 0 : i32
    return %c0_i32, %c0_i32_0 : i32, i32
  }
  func.func @transform_17(%arg0: i32) -> (i32, i32) {
    %c0_i32 = arith.constant 0 : i32
    %c0_i32_0 = arith.constant 0 : i32
    return %arg0, %c0_i32 : i32, i32
  }
}

module attributes {stable_mosaic.version = 11 : i64} {
  func.func @_autoencoder_kernel(%arg0: i32, %arg1: memref<16x32xf32, #tpu.memory_space<vmem>>, %arg2: memref<32x64xbf16, #tpu.memory_space<vmem>>, %arg3: memref<1x64xf32, #tpu.memory_space<vmem>>, %arg4: memref<64x32xbf16, #tpu.memory_space<vmem>>, %arg5: memref<1x32xf32, #tpu.memory_space<vmem>>, %arg6: memref<32x16xbf16, #tpu.memory_space<vmem>>, %arg7: memref<1x16xf32, #tpu.memory_space<vmem>>, %arg8: memref<16x8xbf16, #tpu.memory_space<vmem>>, %arg9: memref<1x8xf32, #tpu.memory_space<vmem>>, %arg10: memref<8x16xbf16, #tpu.memory_space<vmem>>, %arg11: memref<1x16xf32, #tpu.memory_space<vmem>>, %arg12: memref<16x32xbf16, #tpu.memory_space<vmem>>, %arg13: memref<1x32xf32, #tpu.memory_space<vmem>>, %arg14: memref<32x64xbf16, #tpu.memory_space<vmem>>, %arg15: memref<1x64xf32, #tpu.memory_space<vmem>>, %arg16: memref<64x32xbf16, #tpu.memory_space<vmem>>, %arg17: memref<1x32xf32, #tpu.memory_space<vmem>>, %arg18: memref<16x128xf32, #tpu.memory_space<vmem>>) attributes {dimension_semantics = [#tpu.dimension_semantics<parallel>], iteration_bounds = array<i64: 1>, scalar_prefetch = 0 : i64, scratch_operands = 0 : i64, tpu.core_type = #tpu.core_type<tc>, window_params = [{transform_indices = @transform_0, window_bounds = array<i64: 16, 32>}, {pipeline_mode = #tpu.pipeline_mode<synchronous>, transform_indices = @transform_1, window_bounds = array<i64: 32, 64>}, {pipeline_mode = #tpu.pipeline_mode<synchronous>, transform_indices = @transform_2, window_bounds = array<i64: 1, 64>}, {pipeline_mode = #tpu.pipeline_mode<synchronous>, transform_indices = @transform_3, window_bounds = array<i64: 64, 32>}, {pipeline_mode = #tpu.pipeline_mode<synchronous>, transform_indices = @transform_4, window_bounds = array<i64: 1, 32>}, {pipeline_mode = #tpu.pipeline_mode<synchronous>, transform_indices = @transform_5, window_bounds = array<i64: 32, 16>}, {pipeline_mode = #tpu.pipeline_mode<synchronous>, transform_indices = @transform_6, window_bounds = array<i64: 1, 16>}, {pipeline_mode = #tpu.pipeline_mode<synchronous>, transform_indices = @transform_7, window_bounds = array<i64: 16, 8>}, {pipeline_mode = #tpu.pipeline_mode<synchronous>, transform_indices = @transform_8, window_bounds = array<i64: 1, 8>}, {pipeline_mode = #tpu.pipeline_mode<synchronous>, transform_indices = @transform_9, window_bounds = array<i64: 8, 16>}, {pipeline_mode = #tpu.pipeline_mode<synchronous>, transform_indices = @transform_10, window_bounds = array<i64: 1, 16>}, {pipeline_mode = #tpu.pipeline_mode<synchronous>, transform_indices = @transform_11, window_bounds = array<i64: 16, 32>}, {pipeline_mode = #tpu.pipeline_mode<synchronous>, transform_indices = @transform_12, window_bounds = array<i64: 1, 32>}, {pipeline_mode = #tpu.pipeline_mode<synchronous>, transform_indices = @transform_13, window_bounds = array<i64: 32, 64>}, {pipeline_mode = #tpu.pipeline_mode<synchronous>, transform_indices = @transform_14, window_bounds = array<i64: 1, 64>}, {pipeline_mode = #tpu.pipeline_mode<synchronous>, transform_indices = @transform_15, window_bounds = array<i64: 64, 32>}, {pipeline_mode = #tpu.pipeline_mode<synchronous>, transform_indices = @transform_16, window_bounds = array<i64: 1, 32>}, {transform_indices = @transform_17, window_bounds = array<i64: 16, 128>}]} {
    %c0 = arith.constant 0 : index
    %c0_0 = arith.constant 0 : index
    %0 = vector.load %arg1[%c0, %c0_0] : memref<16x32xf32, #tpu.memory_space<vmem>>, vector<16x32xf32>
    %1 = arith.truncf %0 : vector<16x32xf32> to vector<16x32xbf16>
    %c0_1 = arith.constant 0 : index
    %c0_2 = arith.constant 0 : index
    %2 = vector.load %arg2[%c0_1, %c0_2] : memref<32x64xbf16, #tpu.memory_space<vmem>>, vector<32x64xbf16>
    %cst = arith.constant dense<0.000000e+00> : vector<16x64xf32>
    %3 = tpu.matmul %1, %2, %cst {dimension_numbers = #tpu.dot_dimension_numbers<[1], [0], [0], [1], [0, 0, 1, 1], [], []>} : vector<16x32xbf16>, vector<32x64xbf16>, vector<16x64xf32> -> vector<16x64xf32>
    %c0_3 = arith.constant 0 : index
    %c0_4 = arith.constant 0 : index
    %4 = vector.load %arg3[%c0_3, %c0_4] : memref<1x64xf32, #tpu.memory_space<vmem>>, vector<1x64xf32>
    %5 = vector.broadcast %4 : vector<1x64xf32> to vector<16x64xf32>
    %6 = arith.addf %3, %5 : vector<16x64xf32>
    %7 = math.tanh %6 : vector<16x64xf32>
    %8 = arith.truncf %7 : vector<16x64xf32> to vector<16x64xbf16>
    %c0_5 = arith.constant 0 : index
    %c0_6 = arith.constant 0 : index
    %9 = vector.load %arg4[%c0_5, %c0_6] : memref<64x32xbf16, #tpu.memory_space<vmem>>, vector<64x32xbf16>
    %cst_7 = arith.constant dense<0.000000e+00> : vector<16x32xf32>
    %10 = tpu.matmul %8, %9, %cst_7 {dimension_numbers = #tpu.dot_dimension_numbers<[1], [0], [0], [1], [0, 0, 1, 1], [], []>} : vector<16x64xbf16>, vector<64x32xbf16>, vector<16x32xf32> -> vector<16x32xf32>
    %c0_8 = arith.constant 0 : index
    %c0_9 = arith.constant 0 : index
    %11 = vector.load %arg5[%c0_8, %c0_9] : memref<1x32xf32, #tpu.memory_space<vmem>>, vector<1x32xf32>
    %12 = vector.broadcast %11 : vector<1x32xf32> to vector<16x32xf32>
    %13 = arith.addf %10, %12 : vector<16x32xf32>
    %14 = math.tanh %13 : vector<16x32xf32>
    %15 = arith.truncf %14 : vector<16x32xf32> to vector<16x32xbf16>
    %c0_10 = arith.constant 0 : index
    %c0_11 = arith.constant 0 : index
    %16 = vector.load %arg6[%c0_10, %c0_11] : memref<32x16xbf16, #tpu.memory_space<vmem>>, vector<32x16xbf16>
    %cst_12 = arith.constant dense<0.000000e+00> : vector<16x16xf32>
    %17 = tpu.matmul %15, %16, %cst_12 {dimension_numbers = #tpu.dot_dimension_numbers<[1], [0], [0], [1], [0, 0, 1, 1], [], []>} : vector<16x32xbf16>, vector<32x16xbf16>, vector<16x16xf32> -> vector<16x16xf32>
    %c0_13 = arith.constant 0 : index
    %c0_14 = arith.constant 0 : index
    %18 = vector.load %arg7[%c0_13, %c0_14] : memref<1x16xf32, #tpu.memory_space<vmem>>, vector<1x16xf32>
    %19 = vector.broadcast %18 : vector<1x16xf32> to vector<16x16xf32>
    %20 = arith.addf %17, %19 : vector<16x16xf32>
    %21 = math.tanh %20 : vector<16x16xf32>
    %22 = arith.truncf %21 : vector<16x16xf32> to vector<16x16xbf16>
    %c0_15 = arith.constant 0 : index
    %c0_16 = arith.constant 0 : index
    %23 = vector.load %arg8[%c0_15, %c0_16] : memref<16x8xbf16, #tpu.memory_space<vmem>>, vector<16x8xbf16>
    %cst_17 = arith.constant dense<0.000000e+00> : vector<16x8xf32>
    %24 = tpu.matmul %22, %23, %cst_17 {dimension_numbers = #tpu.dot_dimension_numbers<[1], [0], [0], [1], [0, 0, 1, 1], [], []>} : vector<16x16xbf16>, vector<16x8xbf16>, vector<16x8xf32> -> vector<16x8xf32>
    %c0_18 = arith.constant 0 : index
    %c0_19 = arith.constant 0 : index
    %25 = vector.load %arg9[%c0_18, %c0_19] : memref<1x8xf32, #tpu.memory_space<vmem>>, vector<1x8xf32>
    %26 = vector.broadcast %25 : vector<1x8xf32> to vector<16x8xf32>
    %27 = arith.addf %24, %26 : vector<16x8xf32>
    %28 = math.tanh %27 : vector<16x8xf32>
    %29 = arith.truncf %28 : vector<16x8xf32> to vector<16x8xbf16>
    %c0_20 = arith.constant 0 : index
    %c0_21 = arith.constant 0 : index
    %30 = vector.load %arg10[%c0_20, %c0_21] : memref<8x16xbf16, #tpu.memory_space<vmem>>, vector<8x16xbf16>
    %cst_22 = arith.constant dense<0.000000e+00> : vector<16x16xf32>
    %31 = tpu.matmul %29, %30, %cst_22 {dimension_numbers = #tpu.dot_dimension_numbers<[1], [0], [0], [1], [0, 0, 1, 1], [], []>} : vector<16x8xbf16>, vector<8x16xbf16>, vector<16x16xf32> -> vector<16x16xf32>
    %c0_23 = arith.constant 0 : index
    %c0_24 = arith.constant 0 : index
    %32 = vector.load %arg11[%c0_23, %c0_24] : memref<1x16xf32, #tpu.memory_space<vmem>>, vector<1x16xf32>
    %33 = vector.broadcast %32 : vector<1x16xf32> to vector<16x16xf32>
    %34 = arith.addf %31, %33 : vector<16x16xf32>
    %35 = math.tanh %34 : vector<16x16xf32>
    %36 = arith.truncf %35 : vector<16x16xf32> to vector<16x16xbf16>
    %c0_25 = arith.constant 0 : index
    %c0_26 = arith.constant 0 : index
    %37 = vector.load %arg12[%c0_25, %c0_26] : memref<16x32xbf16, #tpu.memory_space<vmem>>, vector<16x32xbf16>
    %cst_27 = arith.constant dense<0.000000e+00> : vector<16x32xf32>
    %38 = tpu.matmul %36, %37, %cst_27 {dimension_numbers = #tpu.dot_dimension_numbers<[1], [0], [0], [1], [0, 0, 1, 1], [], []>} : vector<16x16xbf16>, vector<16x32xbf16>, vector<16x32xf32> -> vector<16x32xf32>
    %c0_28 = arith.constant 0 : index
    %c0_29 = arith.constant 0 : index
    %39 = vector.load %arg13[%c0_28, %c0_29] : memref<1x32xf32, #tpu.memory_space<vmem>>, vector<1x32xf32>
    %40 = vector.broadcast %39 : vector<1x32xf32> to vector<16x32xf32>
    %41 = arith.addf %38, %40 : vector<16x32xf32>
    %42 = math.tanh %41 : vector<16x32xf32>
    %43 = arith.truncf %42 : vector<16x32xf32> to vector<16x32xbf16>
    %c0_30 = arith.constant 0 : index
    %c0_31 = arith.constant 0 : index
    %44 = vector.load %arg14[%c0_30, %c0_31] : memref<32x64xbf16, #tpu.memory_space<vmem>>, vector<32x64xbf16>
    %cst_32 = arith.constant dense<0.000000e+00> : vector<16x64xf32>
    %45 = tpu.matmul %43, %44, %cst_32 {dimension_numbers = #tpu.dot_dimension_numbers<[1], [0], [0], [1], [0, 0, 1, 1], [], []>} : vector<16x32xbf16>, vector<32x64xbf16>, vector<16x64xf32> -> vector<16x64xf32>
    %c0_33 = arith.constant 0 : index
    %c0_34 = arith.constant 0 : index
    %46 = vector.load %arg15[%c0_33, %c0_34] : memref<1x64xf32, #tpu.memory_space<vmem>>, vector<1x64xf32>
    %47 = vector.broadcast %46 : vector<1x64xf32> to vector<16x64xf32>
    %48 = arith.addf %45, %47 : vector<16x64xf32>
    %49 = math.tanh %48 : vector<16x64xf32>
    %50 = arith.truncf %49 : vector<16x64xf32> to vector<16x64xbf16>
    %c0_35 = arith.constant 0 : index
    %c0_36 = arith.constant 0 : index
    %51 = vector.load %arg16[%c0_35, %c0_36] : memref<64x32xbf16, #tpu.memory_space<vmem>>, vector<64x32xbf16>
    %cst_37 = arith.constant dense<0.000000e+00> : vector<16x32xf32>
    %52 = tpu.matmul %50, %51, %cst_37 {dimension_numbers = #tpu.dot_dimension_numbers<[1], [0], [0], [1], [0, 0, 1, 1], [], []>} : vector<16x64xbf16>, vector<64x32xbf16>, vector<16x32xf32> -> vector<16x32xf32>
    %c0_38 = arith.constant 0 : index
    %c0_39 = arith.constant 0 : index
    %53 = vector.load %arg17[%c0_38, %c0_39] : memref<1x32xf32, #tpu.memory_space<vmem>>, vector<1x32xf32>
    %54 = vector.broadcast %53 : vector<1x32xf32> to vector<16x32xf32>
    %55 = arith.addf %52, %54 : vector<16x32xf32>
    %56 = arith.negf %55 : vector<16x32xf32>
    %57 = math.exp %56 : vector<16x32xf32>
    %cst_40 = arith.constant 1.000000e+00 : f32
    %58 = vector.broadcast %cst_40 : f32 to vector<16x32xf32>
    %59 = arith.addf %58, %57 : vector<16x32xf32>
    %60 = arith.divf %58, %59 : vector<16x32xf32>
    %cst_41 = arith.constant 0.000000e+00 : f32
    %61 = vector.broadcast %cst_41 : f32 to vector<16x88xf32>
    %62 = tpu.concatenate %28, %60, %61 in 1 : vector<16x8xf32>, vector<16x32xf32>, vector<16x88xf32> -> vector<16x128xf32>
    %c0_42 = arith.constant 0 : index
    %c0_43 = arith.constant 0 : index
    %63 = vector.load %arg18[%c0_42, %c0_43] : memref<16x128xf32, #tpu.memory_space<vmem>>, vector<16x128xf32>
    tpu.vector_store %arg18[%c0_42, %c0_43], %62 {strides = array<i32>} : memref<16x128xf32, #tpu.memory_space<vmem>>, vector<16x128xf32>,
    return
  }
  func.func @transform_0(%arg0: i32) -> (i32, i32) {
    %c0_i32 = arith.constant 0 : i32
    %c0_i32_0 = arith.constant 0 : i32
    return %arg0, %c0_i32 : i32, i32
  }
  func.func @transform_1(%arg0: i32) -> (i32, i32) {
    %c0_i32 = arith.constant 0 : i32
    %c0_i32_0 = arith.constant 0 : i32
    %c0_i32_1 = arith.constant 0 : i32
    return %c0_i32, %c0_i32_0 : i32, i32
  }
  func.func @transform_2(%arg0: i32) -> (i32, i32) {
    %c0_i32 = arith.constant 0 : i32
    %c0_i32_0 = arith.constant 0 : i32
    %c0_i32_1 = arith.constant 0 : i32
    return %c0_i32, %c0_i32_0 : i32, i32
  }
  func.func @transform_3(%arg0: i32) -> (i32, i32) {
    %c0_i32 = arith.constant 0 : i32
    %c0_i32_0 = arith.constant 0 : i32
    %c0_i32_1 = arith.constant 0 : i32
    return %c0_i32, %c0_i32_0 : i32, i32
  }
  func.func @transform_4(%arg0: i32) -> (i32, i32) {
    %c0_i32 = arith.constant 0 : i32
    %c0_i32_0 = arith.constant 0 : i32
    %c0_i32_1 = arith.constant 0 : i32
    return %c0_i32, %c0_i32_0 : i32, i32
  }
  func.func @transform_5(%arg0: i32) -> (i32, i32) {
    %c0_i32 = arith.constant 0 : i32
    %c0_i32_0 = arith.constant 0 : i32
    %c0_i32_1 = arith.constant 0 : i32
    return %c0_i32, %c0_i32_0 : i32, i32
  }
  func.func @transform_6(%arg0: i32) -> (i32, i32) {
    %c0_i32 = arith.constant 0 : i32
    %c0_i32_0 = arith.constant 0 : i32
    %c0_i32_1 = arith.constant 0 : i32
    return %c0_i32, %c0_i32_0 : i32, i32
  }
  func.func @transform_7(%arg0: i32) -> (i32, i32) {
    %c0_i32 = arith.constant 0 : i32
    %c0_i32_0 = arith.constant 0 : i32
    %c0_i32_1 = arith.constant 0 : i32
    return %c0_i32, %c0_i32_0 : i32, i32
  }
  func.func @transform_8(%arg0: i32) -> (i32, i32) {
    %c0_i32 = arith.constant 0 : i32
    %c0_i32_0 = arith.constant 0 : i32
    %c0_i32_1 = arith.constant 0 : i32
    return %c0_i32, %c0_i32_0 : i32, i32
  }
  func.func @transform_9(%arg0: i32) -> (i32, i32) {
    %c0_i32 = arith.constant 0 : i32
    %c0_i32_0 = arith.constant 0 : i32
    %c0_i32_1 = arith.constant 0 : i32
    return %c0_i32, %c0_i32_0 : i32, i32
  }
  func.func @transform_10(%arg0: i32) -> (i32, i32) {
    %c0_i32 = arith.constant 0 : i32
    %c0_i32_0 = arith.constant 0 : i32
    %c0_i32_1 = arith.constant 0 : i32
    return %c0_i32, %c0_i32_0 : i32, i32
  }
  func.func @transform_11(%arg0: i32) -> (i32, i32) {
    %c0_i32 = arith.constant 0 : i32
    %c0_i32_0 = arith.constant 0 : i32
    %c0_i32_1 = arith.constant 0 : i32
    return %c0_i32, %c0_i32_0 : i32, i32
  }
  func.func @transform_12(%arg0: i32) -> (i32, i32) {
    %c0_i32 = arith.constant 0 : i32
    %c0_i32_0 = arith.constant 0 : i32
    %c0_i32_1 = arith.constant 0 : i32
    return %c0_i32, %c0_i32_0 : i32, i32
  }
  func.func @transform_13(%arg0: i32) -> (i32, i32) {
    %c0_i32 = arith.constant 0 : i32
    %c0_i32_0 = arith.constant 0 : i32
    %c0_i32_1 = arith.constant 0 : i32
    return %c0_i32, %c0_i32_0 : i32, i32
  }
  func.func @transform_14(%arg0: i32) -> (i32, i32) {
    %c0_i32 = arith.constant 0 : i32
    %c0_i32_0 = arith.constant 0 : i32
    %c0_i32_1 = arith.constant 0 : i32
    return %c0_i32, %c0_i32_0 : i32, i32
  }
  func.func @transform_15(%arg0: i32) -> (i32, i32) {
    %c0_i32 = arith.constant 0 : i32
    %c0_i32_0 = arith.constant 0 : i32
    %c0_i32_1 = arith.constant 0 : i32
    return %c0_i32, %c0_i32_0 : i32, i32
  }
  func.func @transform_16(%arg0: i32) -> (i32, i32) {
    %c0_i32 = arith.constant 0 : i32
    %c0_i32_0 = arith.constant 0 : i32
    %c0_i32_1 = arith.constant 0 : i32
    return %c0_i32, %c0_i32_0 : i32, i32
  }
  func.func @transform_17(%arg0: i32) -> (i32, i32) {
    %c0_i32 = arith.constant 0 : i32
    %c0_i32_0 = arith.constant 0 : i32
    return %arg0, %c0_i32 : i32, i32
  }
}

</mosaic_0001>

<bundles_post_ra>
// kernel: tpu_custom_call.1
= control target key start
LH: loop header
LB: loop body
LE: loop exit
PB: predicated region body
PF: predicated region fallthrough
CT: control target
= control target key end

     0   :  { %s1104_s0 = inlined_call_operand.vmem [shape: f32[16,32], index: 0, kind: input, shape index: {}]   ;;  %s1105_s1 = inlined_call_operand.vmem [shape: bf16[32,64], index: 1, kind: input, shape index: {}]   ;;  %s1106_s2 = inlined_call_operand.vmem [shape: f32[1,64], index: 2, kind: input, shape index: {}]   ;;  %s1107_s3 = inlined_call_operand.vmem [shape: bf16[64,32], index: 3, kind: input, shape index: {}]   ;;  %s1108_s4 = inlined_call_operand.vmem [shape: f32[1,32], index: 4, kind: input, shape index: {}]   ;;  %s1109_s5 = inlined_call_operand.vmem [shape: bf16[32,16], index: 5, kind: input, shape index: {}]   ;;  %s1110_s6 = inlined_call_operand.vmem [shape: f32[1,16], index: 6, kind: input, shape index: {}]   ;;  %s1111_s7 = inlined_call_operand.vmem [shape: bf16[16,8], index: 7, kind: input, shape index: {}]   ;;  %s1112_s8 = inlined_call_operand.vmem [shape: f32[1,8], index: 8, kind: input, shape index: {}]   ;;  %s1113_s9 = inlined_call_operand.vmem [shape: bf16[8,16], index: 9, kind: input, shape index: {}]   ;;  %s1114_s10 = inlined_call_operand.vmem [shape: f32[1,16], index: 10, kind: input, shape index: {}]   ;;  %s1115_s11 = inlined_call_operand.vmem [shape: bf16[16,32], index: 11, kind: input, shape index: {}]   ;;  %s1116_s12 = inlined_call_operand.vmem [shape: f32[1,32], index: 12, kind: input, shape index: {}]   ;;  %s1117_s13 = inlined_call_operand.vmem [shape: bf16[32,64], index: 13, kind: input, shape index: {}]   ;;  %s1118_s14 = inlined_call_operand.vmem [shape: f32[1,64], index: 14, kind: input, shape index: {}]   ;;  %s1119_s15 = inlined_call_operand.vmem [shape: bf16[64,32], index: 15, kind: input, shape index: {}]   ;;  %s1120_s16 = inlined_call_operand.vmem [shape: f32[1,32], index: 16, kind: input, shape index: {}]   ;;  %s1121_s17 = inlined_call_operand.hbm [shape: f32[16,128], index: 17, kind: output, shape index: {}]  }
   0x1   :  { %1124 = sst [smem:[#allocation5_spill]] %s1104_s0 }
   0x2   :  { %1125 = sst [smem:[#allocation6_spill]] %s1105_s1 }
   0x3   :  { %s1126_s26 = sld [smem:[#allocation6_spill]]  ;;  %v874_v1 = vmov 0.0   ;;  %vm875_vm0 = vmmov 0   ;;  %vm84_vm1 = vcmask 261120  }
   0x4   :  { %729 = vmatprep.subr.bf16.mxu1 %v874_v1  ;;  %749 = vmatprep.subr.bf16.mxu0 %v874_v1  ;;  %s1127_s30 = sld [smem:[#allocation5_spill]] }
   0x5   :  { %733 = vmatprep.mubr.msk.bf16.mxu1 %vm875_vm0, %v874_v1  ;;  %753 = vmatprep.mubr.msk.bf16.mxu0 %vm875_vm0, %v874_v1 }
   0x9   :  { %v800_v0 = vld [vmem:[%s1126_s26 + $0x8] sm:$0xff]   ;;  %v801_v2 = vld [vmem:[%s1126_s26] sm:$0xff]  }
   0xa   :  { %730 = vmatpush3.bf16.msra.mxu1 %v800_v0  ;;  %v58_v3 = vld [vmem:[%s1127_s30] sm:$0xff]  ;;  %v59_v4 = vld [vmem:[%s1127_s30 + $0x8] sm:$0xff] }
   0xb   :  { %731 = vmatprep.subr.bf16.mxu1 %v874_v1  ;;  %v60_v5 = vpack.c.bf16 %v59_v4, %v58_v3 }
   0xe   :  { %732 = vmatpush3.bf16.msra.mxu1 %v801_v2 }
   0xf   :  { %737 = vmatprep.subr.bf16.mxu1 %v874_v1 }
  0x11   :  { %734 = vmatmul.mubr.msk.bf16.vlgmr.msra.gmra.mxu1 %vm84_vm1, %v60_v5 }
  0x12   :  { %745 = vmatprep.mubr.msk.bf16.mxu1 %vm875_vm0, %v874_v1 }
  0x13   :  { %22 = vsyncpa [#allocation3], 0  ;;  %v802_v6 = vld [vmem:[%s1107_s3 + $0x18] sm:$0xff]   ;;  %v803_v7 = vld [vmem:[%s1107_s3 + $0x10] sm:$0xff]   ;;  %vm171_vm2 = vcmask 523264   ;;  %vm304_vm3 = vcmask 130048  }
  0x14   :  { %738 = vmatpush3.bf16.msra.mxu1 %v802_v6  ;;  %v804_v8 = vld [vmem:[%s1107_s3 + $0x8] sm:$0xff]   ;;  %v805_v9 = vld [vmem:[%s1107_s3] sm:$0xff]   ;;  %vm364_vm4 = vcmask 1043456   ;;  %vm360_vm5 = vcmask 64512   ;;  %vm649_vm6 = vcmask 326656  }
  0x15   :  { %739 = vmatprep.subr.bf16.mxu1 %v874_v1  ;;  %v670_v10 = vld [vmem:[%s1106_s2] ss:$0 sm:$0xff]  ;;  %v806_v20 = vld [vmem:[%s1109_s5 + $0x8] sm:$0xff]  }
  0x16   :  { %750 = vmatpush3.bf16.msra.mxu0 %v806_v20  ;;  %v807_v21 = vld [vmem:[%s1109_s5] sm:$0xff]   ;;  %v810_v3 = vld [vmem:[%s1117_s13 + $0x8] sm:$0xff]  }
  0x17   :  { %751 = vmatprep.subr.bf16.mxu0 %v874_v1  ;;  %v674_v22 = vld [vmem:[%s1108_s4] ss:$0 sm:$0xff] }
  0x18   :  { %740 = vmatpush3.bf16.msra.mxu1 %v803_v7  ;;  %v808_v32 = vld [vmem:[%s1111_s7] sm:$0xff]  }
  0x19   :  { %741 = vmatprep.subr.bf16.mxu1 %v874_v1  ;;  %v680_v33 = vld [vmem:[%s1110_s6] ss:$0 sm:$0xff] }
  0x1a   :  { %752 = vmatpush3.bf16.msra.mxu0 %v807_v21  ;;  %v352_v43 = vld [vmem:[%s1113_s9] sm:$0xf] }
  0x1b   :  { %757 = vmatprep.subr.bf16.mxu0 %v874_v1  ;;  %v366_v44 = vsel %vm364_vm4, %v352_v43, 0  ;;  %v684_v45 = vld [vmem:[%s1112_s8] ss:$0 sm:$0xff] }
  0x1c   :  { %742 = vmatpush3.bf16.msra.mxu1 %v804_v8  ;;  %v809_v55 = vld [vmem:[%s1115_s11] sm:$0xff]  }
  0x1d   :  { %743 = vmatprep.subr.bf16.mxu1 %v874_v1  ;;  %v687_v56 = vld [vmem:[%s1114_s10] ss:$0 sm:$0xff] }
  0x1e   :  { %v811_v4 = vld [vmem:[%s1117_s13] sm:$0xff]  }
  0x1f   :  { %v689_v5 = vld [vmem:[%s1116_s12] ss:$0 sm:$0xff] }
  0x20   :  { %744 = vmatpush3.bf16.msra.mxu1 %v805_v9 }
  0x21   :  { %763 = vmatprep.subr.bf16.mxu1 %v874_v1 }
  0xd1   :  { %v122_v11 = vpop.f32.mrf.mxu1 }
  0xd2   :  { %v123_v12 = vadd.f32 %v670_v10, %v122_v11 }
  0xd3   :  { %v735_v13 = vpop.f32.mrf.mxu1 }
  0xd4   :  { %816 = vtanh.f32 %v123_v12 }
  0xd5   :  { %v125_v14 = vpop.f32.mrf.mxu1 }
  0xd6   :  { %v126_v15 = vadd.f32 %v670_v10, %v125_v14 }
  0xd7   :  { %v736_v16 = vpop.f32.mrf.mxu1 }
  0xd8   :  { %818 = vtanh.f32 %v126_v15  ;;  %v812_v15 = vld [vmem:[%s1119_s15 + $0x18] sm:$0xff]   ;;  %v813_v16 = vld [vmem:[%s1119_s15 + $0x10] sm:$0xff]  }
  0xe1   :  { %v817_v17 = vpop.eup %816 }
  0xe5   :  { %v819_v18 = vpop.eup %818 }
  0xe6   :  { %v131_v19 = vpack.c.bf16 %v819_v18, %v817_v17  ;;  %v814_v17 = vld [vmem:[%s1119_s15 + $0x8] sm:$0xff]   ;;  %v815_v18 = vld [vmem:[%s1119_s15] sm:$0xff]  }
  0xe8   :  { %746 = vmatmul.mubr.msk.bf16.vlgmr.msra.gmra.mxu1 %vm171_vm2, %v131_v19  ;;  %v692_v19 = vld [vmem:[%s1118_s14] ss:$0 sm:$0xff]  ;;  %s876_s14 = smov 8  }
  0xe9   :  { %765 = vmatprep.mubr.msk.bf16.mxu1 %vm875_vm0, %v874_v1  ;;  %764 = vmatpush3.bf16.msra.mxu1 %v366_v44 }
  0xea   :  { %775 = vmatprep.subr.bf16.mxu1 %v874_v1 }
 0x1a8   :  { %v209_v23 = vpop.f32.mrf.mxu1 }
 0x1a9   :  { %v210_v24 = vadd.f32 %v674_v22, %v209_v23 }
 0x1aa   :  { %v747_v25 = vpop.f32.mrf.mxu1 }
 0x1ab   :  { %820 = vtanh.f32 %v210_v24 }
 0x1ac   :  { %v212_v26 = vpop.f32.mrf.mxu1 }
 0x1ad   :  { %v213_v27 = vadd.f32 %v674_v22, %v212_v26 }
 0x1ae   :  { %v748_v28 = vpop.f32.mrf.mxu1 }
 0x1af   :  { %822 = vtanh.f32 %v213_v27 }
 0x1b8   :  { %v821_v29 = vpop.eup %820 }
 0x1bc   :  { %v823_v30 = vpop.eup %822 }
 0x1bd   :  { %v218_v31 = vpack.c.bf16 %v823_v30, %v821_v29 }
 0x1bf   :  { %754 = vmatmul.mubr.msk.bf16.vlgmr.msra.gmra.mxu0 %vm84_vm1, %v218_v31 }
 0x1c0   :  { %759 = vmatprep.mubr.msk.bf16.mxu0 %vm875_vm0, %v874_v1  ;;  %758 = vmatpush3.bf16.msra.mxu0 %v808_v32 }
 0x1c1   :  { %769 = vmatprep.subr.bf16.mxu0 %v874_v1 }
 0x27f   :  { %v279_v34 = vpop.f32.mrf.mxu0 }
 0x280   :  { %v280_v35 = vadd.f32 %v680_v33, %v279_v34 }
 0x281   :  { %v755_v36 = vpop.f32.mrf.mxu0 }
 0x282   :  { %824 = vtanh.f32 %v280_v35 }
 0x283   :  { %v282_v37 = vpop.f32.mrf.mxu0 }
 0x284   :  { %v283_v38 = vadd.f32 %v680_v33, %v282_v37 }
 0x285   :  { %v756_v39 = vpop.f32.mrf.mxu0 }
 0x286   :  { %826 = vtanh.f32 %v283_v38 }
 0x28f   :  { %v825_v40 = vpop.eup %824 }
 0x293   :  { %v827_v41 = vpop.eup %826 }
 0x294   :  { %v288_v42 = vpack.c.bf16 %v827_v41, %v825_v40 }
 0x296   :  { %760 = vmatmul.mubr.msk.bf16.vlgmr.msra.gmra.mxu0 %vm304_vm3, %v288_v42 }
 0x297   :  { %771 = vmatprep.mubr.msk.bf16.mxu0 %vm875_vm0, %v874_v1  ;;  %770 = vmatpush3.bf16.msra.mxu0 %v809_v55 }
 0x298   :  { %783 = vmatprep.subr.bf16.mxu0 %v874_v1 }
 0x356   :  { %v342_v46 = vpop.f32.mrf.mxu0 }
 0x357   :  { %v343_v47 = vadd.f32 %v684_v45, %v342_v46 }
 0x358   :  { %v761_v48 = vpop.f32.mrf.mxu0 }
 0x359   :  { %828 = vtanh.f32 %v343_v47 }
 0x35a   :  { %v345_v49 = vpop.f32.mrf.mxu0 }
 0x35b   :  { %v346_v50 = vadd.f32 %v684_v45, %v345_v49 }
 0x35c   :  { %v762_v51 = vpop.f32.mrf.mxu0 }
 0x35d   :  { %830 = vtanh.f32 %v346_v50 }
 0x366   :  { %v1045_v52 = vpop.eup %828 }
 0x36a   :  { %v1047_v53 = vpop.eup %830 }
 0x36b   :  { %v351_v54 = vpack.c.bf16 %v1047_v53, %v1045_v52 }
 0x36d   :  { %766 = vmatmul.mubr.msk.bf16.vlgmr.msra.gmra.mxu1 %vm360_vm5, %v351_v54 }
 0x36e   :  { %779 = vmatprep.mubr.msk.bf16.mxu1 %vm875_vm0, %v874_v1  ;;  %776 = vmatpush3.bf16.msra.mxu1 %v810_v3 }
 0x36f   :  { %777 = vmatprep.subr.bf16.mxu1 %v874_v1 }
 0x372   :  { %778 = vmatpush3.bf16.msra.mxu1 %v811_v4 }
 0x42d   :  { %v402_v57 = vpop.f32.mrf.mxu1 }
 0x42e   :  { %v403_v58 = vadd.f32 %v687_v56, %v402_v57 }
 0x42f   :  { %v767_v59 = vpop.f32.mrf.mxu1 }
 0x430   :  { %832 = vtanh.f32 %v403_v58 }
 0x431   :  { %v405_v60 = vpop.f32.mrf.mxu1 }
 0x432   :  { %v406_v61 = vadd.f32 %v687_v56, %v405_v60 }
 0x433   :  { %v768_v62 = vpop.f32.mrf.mxu1 }
 0x434   :  { %834 = vtanh.f32 %v406_v61 }
 0x43d   :  { %v833_v63 = vpop.eup %832 }
 0x441   :  { %v835_v0 = vpop.eup %834 }
 0x442   :  { %v411_v2 = vpack.c.bf16 %v835_v0, %v833_v63 }
 0x444   :  { %772 = vmatmul.mubr.msk.bf16.vlgmr.msra.gmra.mxu0 %vm304_vm3, %v411_v2 }
 0x445   :  { %791 = vmatprep.mubr.msk.bf16.mxu0 %vm875_vm0, %v874_v1  ;;  %784 = vmatpush3.bf16.msra.mxu0 %v812_v15 }
 0x446   :  { %785 = vmatprep.subr.bf16.mxu0 %v874_v1 }
 0x449   :  { %786 = vmatpush3.bf16.msra.mxu0 %v813_v16 }
 0x44a   :  { %787 = vmatprep.subr.bf16.mxu0 %v874_v1 }
 0x44d   :  { %788 = vmatpush3.bf16.msra.mxu0 %v814_v17 }
 0x44e   :  { %789 = vmatprep.subr.bf16.mxu0 %v874_v1  ;;  %v696_v1 = vld [vmem:[%s1120_s16] ss:$0 sm:$0xff]  ;;  %s877_s16 = smov [#allocation2]  }
 0x44f   :  { %s659_s4 = sshll.u32 %s877_s16, 4  ;;  %s660_s4 = int_to_ptr.vmem [resolvable:$true] %s659_s4 }
 0x450   :  { %s852_s1 = scalar_lea.vmem %s660_s4, 256  ;;  %p857_p1 = scmp.lt.s32.totalorder %s660_s4, %s660_s4 }
 0x451   :  { %790 = vmatpush3.bf16.msra.mxu0 %v815_v18  ;;  %p853_p0 = scmp.ne.s32.totalorder %s660_s4, %s852_s1  ;;  %p858_p2 = scmp.lt.s32.totalorder %s852_s1, %s852_s1 }
 0x453   :  { %p859_p3 = por %p858_p2, %p857_p1 }
 0x455   :  { %p860_p4 = pnand %p859_p3, %p853_p0 }
 0x504   :  { %v464_v6 = vpop.f32.mrf.mxu0 }
 0x505   :  { %v465_v7 = vadd.f32 %v689_v5, %v464_v6 }
 0x506   :  { %v773_v8 = vpop.f32.mrf.mxu0 }
 0x507   :  { %836 = vtanh.f32 %v465_v7 }
 0x508   :  { %v467_v9 = vpop.f32.mrf.mxu0 }
 0x509   :  { %v468_v10 = vadd.f32 %v689_v5, %v467_v9 }
 0x50a   :  { %v774_v11 = vpop.f32.mrf.mxu0 }
 0x50b   :  { %838 = vtanh.f32 %v468_v10 }
 0x514   :  { %v837_v12 = vpop.eup %836 }
 0x518   :  { %v839_v13 = vpop.eup %838 }
 0x519   :  { %v473_v14 = vpack.c.bf16 %v839_v13, %v837_v12 }
 0x51b   :  { %780 = vmatmul.mubr.msk.bf16.vlgmr.msra.gmra.mxu1 %vm84_vm1, %v473_v14 }
 0x5db   :  { %v534_v20 = vpop.f32.mrf.mxu1 }
 0x5dc   :  { %v535_v21 = vadd.f32 %v692_v19, %v534_v20 }
 0x5dd   :  { %v781_v22 = vpop.f32.mrf.mxu1 }
 0x5de   :  { %840 = vtanh.f32 %v535_v21 }
 0x5df   :  { %v537_v23 = vpop.f32.mrf.mxu1 }
 0x5e0   :  { %v538_v24 = vadd.f32 %v692_v19, %v537_v23 }
 0x5e1   :  { %v782_v25 = vpop.f32.mrf.mxu1 }
 0x5e2   :  { %842 = vtanh.f32 %v538_v24 }
 0x5eb   :  { %v841_v26 = vpop.eup %840 }
 0x5ef   :  { %v843_v27 = vpop.eup %842 }
 0x5f0   :  { %v543_v28 = vpack.c.bf16 %v843_v27, %v841_v26 }
 0x5f2   :  { %792 = vmatmul.mubr.msk.bf16.vlgmr.msra.gmra.mxu0 %vm171_vm2, %v543_v28 }
 0x6b2   :  { %v620_v29 = vpop.f32.mrf.mxu0 }
 0x6b3   :  { %v621_v30 = vadd.f32 %v696_v1, %v620_v29 }
 0x6b4   :  { %v793_v31 = vpop.f32.mrf.mxu0 }
 0x6b5   :  { %v702_v32 = vmul.f32 -1.442695, %v621_v30 }
 0x6b6   :  { %v623_v33 = vpop.f32.mrf.mxu0 }
 0x6b7   :  { %844 = vpow2.f32 %v702_v32  ;;  %v624_v34 = vadd.f32 %v696_v1, %v623_v33 }
 0x6b8   :  { %v794_v35 = vpop.f32.mrf.mxu0 }
 0x6b9   :  { %v703_v36 = vmul.f32 -1.442695, %v624_v34 }
 0x6bb   :  { %846 = vpow2.f32 %v703_v36 }
 0x6c4   :  { %v845_v37 = vpop.eup %844 }
 0x6c5   :  { %v633_v38 = vadd.f32 1.0, %v845_v37 }
 0x6c7   :  { %848 = vrcp.f32 %v633_v38 }
 0x6c8   :  { %v847_v39 = vpop.eup %846 }
 0x6c9   :  { %v634_v40 = vadd.f32 1.0, %v847_v39 }
 0x6cb   :  { %850 = vrcp.f32 %v634_v40 }
 0x6d4   :  { %v849_v41 = vpop.eup %848 }
 0x6d5   :  { %641 = vrot.lane.b32.xlu0 %v849_v41, %s876_s14 }
 0x6d8   :  { %v851_v42 = vpop.eup %850 }
 0x6d9   :  { %643 = vrot.lane.b32.xlu0 %v851_v42, %s876_s14 }
 0x747   :  { %v642_v43 = vpop.permute.xlu0 %641 }
 0x748   :  { %v647_v44 = vsel %vm360_vm5, %v1045_v52, %v642_v43 }
 0x749   :  { %v650_v45 = vsel %vm649_vm6, %v647_v44, 0.0 }
 0x74a   :  { %652 = vst [vmem:[#allocation2] sm:$0xff] %v650_v45 }
 0x74b   :  { %v644_v46 = vpop.permute.xlu0 %643 }
 0x74c   :  { %v648_v47 = vsel %vm360_vm5, %v1047_v53, %v644_v46 }
 0x74d   :  { %v651_v48 = vsel %vm649_vm6, %v648_v47, 0.0 }
 0x74e   :  { %653 = vst [vmem:[#allocation2 + $0x8] sm:$0xff] %v651_v48 }
 0x74f   :  { %863 = shalt.err (!%p860_p4)
}
 0x750   :  { %s878_s7 = smov 128  }
 0x751   :  { %665 = dma.vmem_to_hbm [thread:$0]  %s660_s4, 256, %s1121_s17, [#allocation3], %s878_s7, %s878_s7, %s876_s14  }
 0x752   :  { %872 = dma.done.wait [#allocation3], 256  }
 0x753   :  { %873 = vsyncadd [#allocation3], 4294967040 }
 0x754   :  { %669 = vsyncpa [#allocation3], 1 }

// kernel: tpu_custom_call.1
= control target key start
LH: loop header
LB: loop body
LE: loop exit
PB: predicated region body
PF: predicated region fallthrough
CT: control target
= control target key end

     0   :  { %s1104_s0 = inlined_call_operand.vmem [shape: f32[16,32], index: 0, kind: input, shape index: {}]   ;;  %s1105_s1 = inlined_call_operand.vmem [shape: bf16[32,64], index: 1, kind: input, shape index: {}]   ;;  %s1106_s2 = inlined_call_operand.vmem [shape: f32[1,64], index: 2, kind: input, shape index: {}]   ;;  %s1107_s3 = inlined_call_operand.vmem [shape: bf16[64,32], index: 3, kind: input, shape index: {}]   ;;  %s1108_s4 = inlined_call_operand.vmem [shape: f32[1,32], index: 4, kind: input, shape index: {}]   ;;  %s1109_s5 = inlined_call_operand.vmem [shape: bf16[32,16], index: 5, kind: input, shape index: {}]   ;;  %s1110_s6 = inlined_call_operand.vmem [shape: f32[1,16], index: 6, kind: input, shape index: {}]   ;;  %s1111_s7 = inlined_call_operand.vmem [shape: bf16[16,8], index: 7, kind: input, shape index: {}]   ;;  %s1112_s8 = inlined_call_operand.vmem [shape: f32[1,8], index: 8, kind: input, shape index: {}]   ;;  %s1113_s9 = inlined_call_operand.vmem [shape: bf16[8,16], index: 9, kind: input, shape index: {}]   ;;  %s1114_s10 = inlined_call_operand.vmem [shape: f32[1,16], index: 10, kind: input, shape index: {}]   ;;  %s1115_s11 = inlined_call_operand.vmem [shape: bf16[16,32], index: 11, kind: input, shape index: {}]   ;;  %s1116_s12 = inlined_call_operand.vmem [shape: f32[1,32], index: 12, kind: input, shape index: {}]   ;;  %s1117_s13 = inlined_call_operand.vmem [shape: bf16[32,64], index: 13, kind: input, shape index: {}]   ;;  %s1118_s14 = inlined_call_operand.vmem [shape: f32[1,64], index: 14, kind: input, shape index: {}]   ;;  %s1119_s15 = inlined_call_operand.vmem [shape: bf16[64,32], index: 15, kind: input, shape index: {}]   ;;  %s1120_s16 = inlined_call_operand.vmem [shape: f32[1,32], index: 16, kind: input, shape index: {}]   ;;  %s1121_s17 = inlined_call_operand.hbm [shape: f32[16,128], index: 17, kind: output, shape index: {}]  }
   0x1   :  { %1124 = sst [smem:[#allocation5_spill]] %s1104_s0 }
   0x2   :  { %1125 = sst [smem:[#allocation6_spill]] %s1105_s1 }
   0x3   :  { %s1126_s26 = sld [smem:[#allocation6_spill]]  ;;  %v874_v1 = vmov 0.0   ;;  %vm875_vm0 = vmmov 0   ;;  %vm84_vm1 = vcmask 261120  }
   0x4   :  { %729 = vmatprep.subr.bf16.mxu1 %v874_v1  ;;  %749 = vmatprep.subr.bf16.mxu0 %v874_v1  ;;  %s1127_s30 = sld [smem:[#allocation5_spill]] }
   0x5   :  { %733 = vmatprep.mubr.msk.bf16.mxu1 %vm875_vm0, %v874_v1  ;;  %753 = vmatprep.mubr.msk.bf16.mxu0 %vm875_vm0, %v874_v1 }
   0x9   :  { %v800_v0 = vld [vmem:[%s1126_s26 + $0x8] sm:$0xff]   ;;  %v801_v2 = vld [vmem:[%s1126_s26] sm:$0xff]  }
   0xa   :  { %730 = vmatpush3.bf16.msra.mxu1 %v800_v0  ;;  %v58_v3 = vld [vmem:[%s1127_s30] sm:$0xff]  ;;  %v59_v4 = vld [vmem:[%s1127_s30 + $0x8] sm:$0xff] }
   0xb   :  { %731 = vmatprep.subr.bf16.mxu1 %v874_v1  ;;  %v60_v5 = vpack.c.bf16 %v59_v4, %v58_v3 }
   0xe   :  { %732 = vmatpush3.bf16.msra.mxu1 %v801_v2 }
   0xf   :  { %737 = vmatprep.subr.bf16.mxu1 %v874_v1 }
  0x11   :  { %734 = vmatmul.mubr.msk.bf16.vlgmr.msra.gmra.mxu1 %vm84_vm1, %v60_v5 }
  0x12   :  { %745 = vmatprep.mubr.msk.bf16.mxu1 %vm875_vm0, %v874_v1 }
  0x13   :  { %22 = vsyncpa [#allocation3], 0  ;;  %v802_v6 = vld [vmem:[%s1107_s3 + $0x18] sm:$0xff]   ;;  %v803_v7 = vld [vmem:[%s1107_s3 + $0x10] sm:$0xff]   ;;  %vm171_vm2 = vcmask 523264   ;;  %vm304_vm3 = vcmask 130048  }
  0x14   :  { %738 = vmatpush3.bf16.msra.mxu1 %v802_v6  ;;  %v804_v8 = vld [vmem:[%s1107_s3 + $0x8] sm:$0xff]   ;;  %v805_v9 = vld [vmem:[%s1107_s3] sm:$0xff]   ;;  %vm364_vm4 = vcmask 1043456   ;;  %vm360_vm5 = vcmask 64512   ;;  %vm649_vm6 = vcmask 326656  }
  0x15   :  { %739 = vmatprep.subr.bf16.mxu1 %v874_v1  ;;  %v670_v10 = vld [vmem:[%s1106_s2] ss:$0 sm:$0xff]  ;;  %v806_v20 = vld [vmem:[%s1109_s5 + $0x8] sm:$0xff]  }
  0x16   :  { %750 = vmatpush3.bf16.msra.mxu0 %v806_v20  ;;  %v807_v21 = vld [vmem:[%s1109_s5] sm:$0xff]   ;;  %v810_v3 = vld [vmem:[%s1117_s13 + $0x8] sm:$0xff]  }
  0x17   :  { %751 = vmatprep.subr.bf16.mxu0 %v874_v1  ;;  %v674_v22 = vld [vmem:[%s1108_s4] ss:$0 sm:$0xff] }
  0x18   :  { %740 = vmatpush3.bf16.msra.mxu1 %v803_v7  ;;  %v808_v32 = vld [vmem:[%s1111_s7] sm:$0xff]  }
  0x19   :  { %741 = vmatprep.subr.bf16.mxu1 %v874_v1  ;;  %v680_v33 = vld [vmem:[%s1110_s6] ss:$0 sm:$0xff] }
  0x1a   :  { %752 = vmatpush3.bf16.msra.mxu0 %v807_v21  ;;  %v352_v43 = vld [vmem:[%s1113_s9] sm:$0xf] }
  0x1b   :  { %757 = vmatprep.subr.bf16.mxu0 %v874_v1  ;;  %v366_v44 = vsel %vm364_vm4, %v352_v43, 0  ;;  %v684_v45 = vld [vmem:[%s1112_s8] ss:$0 sm:$0xff] }
  0x1c   :  { %742 = vmatpush3.bf16.msra.mxu1 %v804_v8  ;;  %v809_v55 = vld [vmem:[%s1115_s11] sm:$0xff]  }
  0x1d   :  { %743 = vmatprep.subr.bf16.mxu1 %v874_v1  ;;  %v687_v56 = vld [vmem:[%s1114_s10] ss:$0 sm:$0xff] }
  0x1e   :  { %v811_v4 = vld [vmem:[%s1117_s13] sm:$0xff]  }
  0x1f   :  { %v689_v5 = vld [vmem:[%s1116_s12] ss:$0 sm:$0xff] }
  0x20   :  { %744 = vmatpush3.bf16.msra.mxu1 %v805_v9 }
  0x21   :  { %763 = vmatprep.subr.bf16.mxu1 %v874_v1 }
  0xd1   :  { %v122_v11 = vpop.f32.mrf.mxu1 }
  0xd2   :  { %v123_v12 = vadd.f32 %v670_v10, %v122_v11 }
  0xd3   :  { %v735_v13 = vpop.f32.mrf.mxu1 }
  0xd4   :  { %816 = vtanh.f32 %v123_v12 }
  0xd5   :  { %v125_v14 = vpop.f32.mrf.mxu1 }
  0xd6   :  { %v126_v15 = vadd.f32 %v670_v10, %v125_v14 }
  0xd7   :  { %v736_v16 = vpop.f32.mrf.mxu1 }
  0xd8   :  { %818 = vtanh.f32 %v126_v15  ;;  %v812_v15 = vld [vmem:[%s1119_s15 + $0x18] sm:$0xff]   ;;  %v813_v16 = vld [vmem:[%s1119_s15 + $0x10] sm:$0xff]  }
  0xe1   :  { %v817_v17 = vpop.eup %816 }
  0xe5   :  { %v819_v18 = vpop.eup %818 }
  0xe6   :  { %v131_v19 = vpack.c.bf16 %v819_v18, %v817_v17  ;;  %v814_v17 = vld [vmem:[%s1119_s15 + $0x8] sm:$0xff]   ;;  %v815_v18 = vld [vmem:[%s1119_s15] sm:$0xff]  }
  0xe8   :  { %746 = vmatmul.mubr.msk.bf16.vlgmr.msra.gmra.mxu1 %vm171_vm2, %v131_v19  ;;  %v692_v19 = vld [vmem:[%s1118_s14] ss:$0 sm:$0xff]  ;;  %s876_s14 = smov 8  }
  0xe9   :  { %765 = vmatprep.mubr.msk.bf16.mxu1 %vm875_vm0, %v874_v1  ;;  %764 = vmatpush3.bf16.msra.mxu1 %v366_v44 }
  0xea   :  { %775 = vmatprep.subr.bf16.mxu1 %v874_v1 }
 0x1a8   :  { %v209_v23 = vpop.f32.mrf.mxu1 }
 0x1a9   :  { %v210_v24 = vadd.f32 %v674_v22, %v209_v23 }
 0x1aa   :  { %v747_v25 = vpop.f32.mrf.mxu1 }
 0x1ab   :  { %820 = vtanh.f32 %v210_v24 }
 0x1ac   :  { %v212_v26 = vpop.f32.mrf.mxu1 }
 0x1ad   :  { %v213_v27 = vadd.f32 %v674_v22, %v212_v26 }
 0x1ae   :  { %v748_v28 = vpop.f32.mrf.mxu1 }
 0x1af   :  { %822 = vtanh.f32 %v213_v27 }
 0x1b8   :  { %v821_v29 = vpop.eup %820 }
 0x1bc   :  { %v823_v30 = vpop.eup %822 }
 0x1bd   :  { %v218_v31 = vpack.c.bf16 %v823_v30, %v821_v29 }
 0x1bf   :  { %754 = vmatmul.mubr.msk.bf16.vlgmr.msra.gmra.mxu0 %vm84_vm1, %v218_v31 }
 0x1c0   :  { %759 = vmatprep.mubr.msk.bf16.mxu0 %vm875_vm0, %v874_v1  ;;  %758 = vmatpush3.bf16.msra.mxu0 %v808_v32 }
 0x1c1   :  { %769 = vmatprep.subr.bf16.mxu0 %v874_v1 }
 0x27f   :  { %v279_v34 = vpop.f32.mrf.mxu0 }
 0x280   :  { %v280_v35 = vadd.f32 %v680_v33, %v279_v34 }
 0x281   :  { %v755_v36 = vpop.f32.mrf.mxu0 }
 0x282   :  { %824 = vtanh.f32 %v280_v35 }
 0x283   :  { %v282_v37 = vpop.f32.mrf.mxu0 }
 0x284   :  { %v283_v38 = vadd.f32 %v680_v33, %v282_v37 }
 0x285   :  { %v756_v39 = vpop.f32.mrf.mxu0 }
 0x286   :  { %826 = vtanh.f32 %v283_v38 }
 0x28f   :  { %v825_v40 = vpop.eup %824 }
 0x293   :  { %v827_v41 = vpop.eup %826 }
 0x294   :  { %v288_v42 = vpack.c.bf16 %v827_v41, %v825_v40 }
 0x296   :  { %760 = vmatmul.mubr.msk.bf16.vlgmr.msra.gmra.mxu0 %vm304_vm3, %v288_v42 }
 0x297   :  { %771 = vmatprep.mubr.msk.bf16.mxu0 %vm875_vm0, %v874_v1  ;;  %770 = vmatpush3.bf16.msra.mxu0 %v809_v55 }
 0x298   :  { %783 = vmatprep.subr.bf16.mxu0 %v874_v1 }
 0x356   :  { %v342_v46 = vpop.f32.mrf.mxu0 }
 0x357   :  { %v343_v47 = vadd.f32 %v684_v45, %v342_v46 }
 0x358   :  { %v761_v48 = vpop.f32.mrf.mxu0 }
 0x359   :  { %828 = vtanh.f32 %v343_v47 }
 0x35a   :  { %v345_v49 = vpop.f32.mrf.mxu0 }
 0x35b   :  { %v346_v50 = vadd.f32 %v684_v45, %v345_v49 }
 0x35c   :  { %v762_v51 = vpop.f32.mrf.mxu0 }
 0x35d   :  { %830 = vtanh.f32 %v346_v50 }
 0x366   :  { %v1045_v52 = vpop.eup %828 }
 0x36a   :  { %v1047_v53 = vpop.eup %830 }
 0x36b   :  { %v351_v54 = vpack.c.bf16 %v1047_v53, %v1045_v52 }
 0x36d   :  { %766 = vmatmul.mubr.msk.bf16.vlgmr.msra.gmra.mxu1 %vm360_vm5, %v351_v54 }
 0x36e   :  { %779 = vmatprep.mubr.msk.bf16.mxu1 %vm875_vm0, %v874_v1  ;;  %776 = vmatpush3.bf16.msra.mxu1 %v810_v3 }
 0x36f   :  { %777 = vmatprep.subr.bf16.mxu1 %v874_v1 }
 0x372   :  { %778 = vmatpush3.bf16.msra.mxu1 %v811_v4 }
 0x42d   :  { %v402_v57 = vpop.f32.mrf.mxu1 }
 0x42e   :  { %v403_v58 = vadd.f32 %v687_v56, %v402_v57 }
 0x42f   :  { %v767_v59 = vpop.f32.mrf.mxu1 }
 0x430   :  { %832 = vtanh.f32 %v403_v58 }
 0x431   :  { %v405_v60 = vpop.f32.mrf.mxu1 }
 0x432   :  { %v406_v61 = vadd.f32 %v687_v56, %v405_v60 }
 0x433   :  { %v768_v62 = vpop.f32.mrf.mxu1 }
 0x434   :  { %834 = vtanh.f32 %v406_v61 }
 0x43d   :  { %v833_v63 = vpop.eup %832 }
 0x441   :  { %v835_v0 = vpop.eup %834 }
 0x442   :  { %v411_v2 = vpack.c.bf16 %v835_v0, %v833_v63 }
 0x444   :  { %772 = vmatmul.mubr.msk.bf16.vlgmr.msra.gmra.mxu0 %vm304_vm3, %v411_v2 }
 0x445   :  { %791 = vmatprep.mubr.msk.bf16.mxu0 %vm875_vm0, %v874_v1  ;;  %784 = vmatpush3.bf16.msra.mxu0 %v812_v15 }
 0x446   :  { %785 = vmatprep.subr.bf16.mxu0 %v874_v1 }
 0x449   :  { %786 = vmatpush3.bf16.msra.mxu0 %v813_v16 }
 0x44a   :  { %787 = vmatprep.subr.bf16.mxu0 %v874_v1 }
 0x44d   :  { %788 = vmatpush3.bf16.msra.mxu0 %v814_v17 }
 0x44e   :  { %789 = vmatprep.subr.bf16.mxu0 %v874_v1  ;;  %v696_v1 = vld [vmem:[%s1120_s16] ss:$0 sm:$0xff]  ;;  %s877_s16 = smov [#allocation2]  }
 0x44f   :  { %s659_s4 = sshll.u32 %s877_s16, 4  ;;  %s660_s4 = int_to_ptr.vmem [resolvable:$true] %s659_s4 }
 0x450   :  { %s852_s1 = scalar_lea.vmem %s660_s4, 256  ;;  %p857_p1 = scmp.lt.s32.totalorder %s660_s4, %s660_s4 }
 0x451   :  { %790 = vmatpush3.bf16.msra.mxu0 %v815_v18  ;;  %p853_p0 = scmp.ne.s32.totalorder %s660_s4, %s852_s1  ;;  %p858_p2 = scmp.lt.s32.totalorder %s852_s1, %s852_s1 }
 0x453   :  { %p859_p3 = por %p858_p2, %p857_p1 }
 0x455   :  { %p860_p4 = pnand %p859_p3, %p853_p0 }
 0x504   :  { %v464_v6 = vpop.f32.mrf.mxu0 }
 0x505   :  { %v465_v7 = vadd.f32 %v689_v5, %v464_v6 }
 0x506   :  { %v773_v8 = vpop.f32.mrf.mxu0 }
 0x507   :  { %836 = vtanh.f32 %v465_v7 }
 0x508   :  { %v467_v9 = vpop.f32.mrf.mxu0 }
 0x509   :  { %v468_v10 = vadd.f32 %v689_v5, %v467_v9 }
 0x50a   :  { %v774_v11 = vpop.f32.mrf.mxu0 }
 0x50b   :  { %838 = vtanh.f32 %v468_v10 }
 0x514   :  { %v837_v12 = vpop.eup %836 }
 0x518   :  { %v839_v13 = vpop.eup %838 }
 0x519   :  { %v473_v14 = vpack.c.bf16 %v839_v13, %v837_v12 }
 0x51b   :  { %780 = vmatmul.mubr.msk.bf16.vlgmr.msra.gmra.mxu1 %vm84_vm1, %v473_v14 }
 0x5db   :  { %v534_v20 = vpop.f32.mrf.mxu1 }
 0x5dc   :  { %v535_v21 = vadd.f32 %v692_v19, %v534_v20 }
 0x5dd   :  { %v781_v22 = vpop.f32.mrf.mxu1 }
 0x5de   :  { %840 = vtanh.f32 %v535_v21 }
 0x5df   :  { %v537_v23 = vpop.f32.mrf.mxu1 }
 0x5e0   :  { %v538_v24 = vadd.f32 %v692_v19, %v537_v23 }
 0x5e1   :  { %v782_v25 = vpop.f32.mrf.mxu1 }
 0x5e2   :  { %842 = vtanh.f32 %v538_v24 }
 0x5eb   :  { %v841_v26 = vpop.eup %840 }
 0x5ef   :  { %v843_v27 = vpop.eup %842 }
 0x5f0   :  { %v543_v28 = vpack.c.bf16 %v843_v27, %v841_v26 }
 0x5f2   :  { %792 = vmatmul.mubr.msk.bf16.vlgmr.msra.gmra.mxu0 %vm171_vm2, %v543_v28 }
 0x6b2   :  { %v620_v29 = vpop.f32.mrf.mxu0 }
 0x6b3   :  { %v621_v30 = vadd.f32 %v696_v1, %v620_v29 }
 0x6b4   :  { %v793_v31 = vpop.f32.mrf.mxu0 }
 0x6b5   :  { %v702_v32 = vmul.f32 -1.442695, %v621_v30 }
 0x6b6   :  { %v623_v33 = vpop.f32.mrf.mxu0 }
 0x6b7   :  { %844 = vpow2.f32 %v702_v32  ;;  %v624_v34 = vadd.f32 %v696_v1, %v623_v33 }
 0x6b8   :  { %v794_v35 = vpop.f32.mrf.mxu0 }
 0x6b9   :  { %v703_v36 = vmul.f32 -1.442695, %v624_v34 }
 0x6bb   :  { %846 = vpow2.f32 %v703_v36 }
 0x6c4   :  { %v845_v37 = vpop.eup %844 }
 0x6c5   :  { %v633_v38 = vadd.f32 1.0, %v845_v37 }
 0x6c7   :  { %848 = vrcp.f32 %v633_v38 }
 0x6c8   :  { %v847_v39 = vpop.eup %846 }
 0x6c9   :  { %v634_v40 = vadd.f32 1.0, %v847_v39 }
 0x6cb   :  { %850 = vrcp.f32 %v634_v40 }
 0x6d4   :  { %v849_v41 = vpop.eup %848 }
 0x6d5   :  { %641 = vrot.lane.b32.xlu0 %v849_v41, %s876_s14 }
 0x6d8   :  { %v851_v42 = vpop.eup %850 }
 0x6d9   :  { %643 = vrot.lane.b32.xlu0 %v851_v42, %s876_s14 }
 0x747   :  { %v642_v43 = vpop.permute.xlu0 %641 }
 0x748   :  { %v647_v44 = vsel %vm360_vm5, %v1045_v52, %v642_v43 }
 0x749   :  { %v650_v45 = vsel %vm649_vm6, %v647_v44, 0.0 }
 0x74a   :  { %652 = vst [vmem:[#allocation2] sm:$0xff] %v650_v45 }
 0x74b   :  { %v644_v46 = vpop.permute.xlu0 %643 }
 0x74c   :  { %v648_v47 = vsel %vm360_vm5, %v1047_v53, %v644_v46 }
 0x74d   :  { %v651_v48 = vsel %vm649_vm6, %v648_v47, 0.0 }
 0x74e   :  { %653 = vst [vmem:[#allocation2 + $0x8] sm:$0xff] %v651_v48 }
 0x74f   :  { %863 = shalt.err (!%p860_p4)
}
 0x750   :  { %s878_s7 = smov 128  }
 0x751   :  { %665 = dma.vmem_to_hbm [thread:$0]  %s660_s4, 256, %s1121_s17, [#allocation3], %s878_s7, %s878_s7, %s876_s14  }
 0x752   :  { %872 = dma.done.wait [#allocation3], 256  }
 0x753   :  { %873 = vsyncadd [#allocation3], 4294967040 }
 0x754   :  { %669 = vsyncpa [#allocation3], 1 }

</bundles_post_ra>
